<compile_context>
chip_gen: v7x
topology: tpu7x:2x2x1
jax: 0.10.0
libtpu: 0.0.40
codegen_flags: <defaults>
</compile_context>

<pallas_src>
import jax
import jax.numpy as jnp
from jax.experimental import pallas as pl
from jax.experimental.pallas import tpu as pltpu

_EPS = 1e-5


# ------------------------- host-side weight prep --------------------------- #

def _band_weights(w_hwio, w_in, stride, pad, w_out):
    """HWIO conv weights -> per-dy banded matmul slabs.

    Returns T of shape (kh, w_in*cin, w_out*cout) with
        T[dy, p*cin+ci, j*cout+co] = w[dy, p - j*stride + pad, ci, co]
    when that kw tap is in range, else 0.  With this, the dy-th row-tap of the
    conv is a single (rows, w_in*cin) @ (w_in*cin, w_out*cout) MXU matmul and
    column zero-padding is baked into the zero entries of the band.
    """
    kh, kw, cin, cout = w_hwio.shape
    p = jnp.arange(w_in)[:, None]            # input column
    j = jnp.arange(w_out)[None, :]           # output column
    dx = p - j * stride + pad                # which kernel tap maps p -> j
    valid = (dx >= 0) & (dx < kw)
    t = w_hwio[:, jnp.clip(dx, 0, kw - 1)]   # (kh, w_in, w_out, cin, cout)
    t = jnp.where(valid[None, :, :, None, None], t, 0.0)
    t = jnp.transpose(t, (0, 1, 3, 2, 4))    # (kh, w_in, cin, w_out, cout)
    return t.reshape(kh, w_in * cin, w_out * cout)


# ------------------------------ fused kernel ------------------------------- #

def _make_block_kernel(*, H, W, cin, cout, stride, ho, wo, has_sc):
    wc_in = W * cin
    wc_out = wo * cout

    def row_conv(a_pad, w_ref, out_h, s):
        # a_pad: (rows+2, w_in*c) f32, row-zero-padded; w_ref: (3, K, N) bf16.
        out = jnp.zeros((out_h, w_ref.shape[-1]), jnp.float32)
        for dy in range(3):
            rows = a_pad[dy:dy + s * (out_h - 1) + 1:s, :]
            out = out + jnp.dot(rows.astype(jnp.bfloat16), w_ref[dy],
                                preferred_element_type=jnp.float32)
        return out

    def kernel(*refs):
        if has_sc:
            (x_ref, w1_ref, b1_ref, w2_ref, b2_ref, wsc_ref, bsc_ref,
             o_ref, xp_ref, yp_ref) = refs
        else:
            (x_ref, w1_ref, b1_ref, w2_ref, b2_ref,
             o_ref, xp_ref, yp_ref) = refs

        x = x_ref[...]                                        # (H, W*cin) f32

        # ---- conv1 (3x3, stride) + folded BN + ReLU: row-pad in VMEM ------
        xp_ref[0:1, :] = jnp.zeros((1, wc_in), jnp.float32)
        xp_ref[H + 1:H + 2, :] = jnp.zeros((1, wc_in), jnp.float32)
        xp_ref[1:H + 1, :] = x
        y = row_conv(xp_ref[...], w1_ref, ho, stride)
        y = jnp.maximum(y + b1_ref[...], 0.0)                 # (ho, wo*cout)

        # ---- conv2 (3x3, stride 1) + folded BN + ReLU: y stays in VMEM ----
        yp_ref[0:1, :] = jnp.zeros((1, wc_out), jnp.float32)
        yp_ref[ho + 1:ho + 2, :] = jnp.zeros((1, wc_out), jnp.float32)
        yp_ref[1:ho + 1, :] = y
        z = row_conv(yp_ref[...], w2_ref, ho, 1)
        z = jnp.maximum(z + b2_ref[...], 0.0)

        # ---- shortcut: 1x1 conv + folded BN (column stride is in the band) -
        if has_sc:
            xs = x if stride == 1 else x[:stride * (ho - 1) + 1:stride, :]
            sc = jnp.dot(xs.astype(jnp.bfloat16), wsc_ref[...],
                         preferred_element_type=jnp.float32) + bsc_ref[...]
        else:
            sc = x                                            # identity (f32)

        # ---- residual add + final ReLU, lane-dense store ------------------
        o_ref[...] = jnp.maximum(z + sc, 0.0).astype(o_ref.dtype)

    return kernel


# ------------------------------ host wrapper ------------------------------- #

class BasicBlockPallas:
    """Pallas/TPU BasicBlock: conv3x3-BN-ReLU-conv3x3-BN-ReLU + shortcut, ReLU.

    BatchNorm uses eval-mode (running-stat) semantics; its scale is folded into
    the conv weights and its shift becomes a per-channel bias inside the kernel.
    """

    def __init__(self, inchannel, outchannel, stride=1, *, key):
        self.stride = stride
        self.has_shortcut = (stride != 1) or (inchannel != outchannel)
        ks = jax.random.split(key, 6)

        def bn_params(k):
            k1, k2, k3, k4 = jax.random.split(k, 4)
            gamma = jax.random.uniform(k1, (outchannel,), jnp.float32, 0.5, 1.5)
            beta = 0.1 * jax.random.normal(k2, (outchannel,), jnp.float32)
            mean = 0.1 * jax.random.normal(k3, (outchannel,), jnp.float32)
            var = jax.random.uniform(k4, (outchannel,), jnp.float32, 0.5, 1.5)
            return gamma, beta, mean, var

        self.w1 = 0.1 * jax.random.normal(ks[0], (3, 3, inchannel, outchannel),
                                          jnp.float32)
        self.bn1 = bn_params(ks[1])
        self.w2 = 0.1 * jax.random.normal(ks[2], (3, 3, outchannel, outchannel),
                                          jnp.float32)
        self.bn2 = bn_params(ks[3])
        if self.has_shortcut:
            self.wsc = 0.1 * jax.random.normal(ks[4],
                                               (1, 1, inchannel, outchannel),
                                               jnp.float32)
            self.bnsc = bn_params(ks[5])

    @staticmethod
    def _fold(bn):
        gamma, beta, mean, var = bn
        scale = gamma / jnp.sqrt(var + _EPS)
        return scale, beta - mean * scale

    def __call__(self, x_nchw):
        n, cin, H, W = x_nchw.shape
        cout = self.w1.shape[-1]
        st = self.stride
        ho = (H + 2 - 3) // st + 1
        wo = (W + 2 - 3) // st + 1

        # NCHW -> NHWC -> row-flattened (N, H, W*cin): width*channels on lanes.
        x = jnp.transpose(x_nchw, (0, 2, 3, 1)).astype(jnp.float32)
        x = x.reshape(n, H, W * cin)

        s1, b1 = self._fold(self.bn1)
        s2, b2 = self._fold(self.bn2)
        # Fold BN scale into the weights, build banded matmul slabs (bf16), and
        # tile the bias to the lane-dense (1, wo*cout) layout.
        w1t = _band_weights(self.w1 * s1, W, st, 1, wo).astype(jnp.bfloat16)
        w2t = _band_weights(self.w2 * s2, wo, 1, 1, wo).astype(jnp.bfloat16)
        b1t = jnp.tile(b1, wo).reshape(1, wo * cout).astype(jnp.float32)
        b2t = jnp.tile(b2, wo).reshape(1, wo * cout).astype(jnp.float32)

        args = [x, w1t, b1t, w2t, b2t]
        in_specs = [
            pl.BlockSpec((pl.Squeezed(), H, W * cin), lambda i: (i, 0, 0)),
            pl.BlockSpec(w1t.shape, lambda i: (0, 0, 0)),
            pl.BlockSpec(b1t.shape, lambda i: (0, 0)),
            pl.BlockSpec(w2t.shape, lambda i: (0, 0, 0)),
            pl.BlockSpec(b2t.shape, lambda i: (0, 0)),
        ]
        if self.has_shortcut:
            ssc, bsc = self._fold(self.bnsc)
            wsct = _band_weights(self.wsc * ssc, W, st, 0, wo)[0]
            wsct = wsct.astype(jnp.bfloat16)
            bsct = jnp.tile(bsc, wo).reshape(1, wo * cout).astype(jnp.float32)
            args += [wsct, bsct]
            in_specs += [
                pl.BlockSpec(wsct.shape, lambda i: (0, 0)),
                pl.BlockSpec(bsct.shape, lambda i: (0, 0)),
            ]

        kernel = _make_block_kernel(H=H, W=W, cin=cin, cout=cout, stride=st,
                                    ho=ho, wo=wo, has_sc=self.has_shortcut)

        out = pl.pallas_call(
            kernel,
            out_shape=jax.ShapeDtypeStruct((n, ho, wo * cout), jnp.float32),
            grid=(n,),
            in_specs=in_specs,
            out_specs=pl.BlockSpec((pl.Squeezed(), ho, wo * cout),
                                   lambda i: (i, 0, 0)),
            scratch_shapes=[
                pltpu.VMEM((H + 2, W * cin), jnp.float32),     # row-padded x
                pltpu.VMEM((ho + 2, wo * cout), jnp.float32),  # row-padded y
            ],
            compiler_params=pltpu.CompilerParams(
                dimension_semantics=("parallel",)),
        )(*args)

        # (N, ho, wo*cout) -> (N, ho, wo, cout) -> NCHW
        return jnp.transpose(out.reshape(n, ho, wo, cout), (0, 3, 1, 2))


# --------------------------- pure-JAX reference ----------------------------- #

def _ref_conv(x, w, stride, pad):
    return jax.lax.conv_general_dilated(
        x, w, window_strides=(stride, stride),
        padding=[(pad, pad), (pad, pad)],
        dimension_numbers=("NCHW", "HWIO", "NCHW"),
        precision=jax.lax.Precision.HIGHEST)


def _ref_bn(x, bn):
    gamma, beta, mean, var = bn
    inv = (gamma / jnp.sqrt(var + _EPS))[None, :, None, None]
    return (x - mean[None, :, None, None]) * inv + beta[None, :, None, None]


def ref_basic_block(block, x):
    y = jax.nn.relu(_ref_bn(_ref_conv(x, block.w1, block.stride, 1), block.bn1))
    y = jax.nn.relu(_ref_bn(_ref_conv(y, block.w2, 1, 1), block.bn2))
    sc = x
    if block.has_shortcut:
        sc = _ref_bn(_ref_conv(x, block.wsc, block.stride, 0), block.bnsc)
    return jax.nn.relu(y + sc)


if __name__ == "__main__":
    key = jax.random.PRNGKey(0)
    kx, kp = jax.random.split(key)
    N, Cin, Cout, H, W = 2, 4, 8, 16, 16
    x = jax.random.normal(kx, (N, Cin, H, W), jnp.float32)

    block = BasicBlockPallas(Cin, Cout, stride=1, key=kp)  # cin != cout -> conv shortcut
    out = jax.block_until_ready(block(x))
    ref = jax.block_until_ready(ref_basic_block(block, x))

    assert out.shape == (N, Cout, H, W), out.shape
    err = float(jnp.max(jnp.abs(out - ref)))
    assert bool(jnp.allclose(out, ref, atol=2e-2, rtol=2e-2)), err
    print("KERNEL_OK")
</pallas_src>

<mosaic_0001>
module attributes {stable_mosaic.version = 11 : i64} {
  func.func @kernel(%arg0: i32, %arg1: memref<1x16x64xf32, #tpu.memory_space<vmem>>, %arg2: memref<3x64x128xbf16, #tpu.memory_space<vmem>>, %arg3: memref<1x128xf32, #tpu.memory_space<vmem>>, %arg4: memref<3x128x128xbf16, #tpu.memory_space<vmem>>, %arg5: memref<1x128xf32, #tpu.memory_space<vmem>>, %arg6: memref<64x128xbf16, #tpu.memory_space<vmem>>, %arg7: memref<1x128xf32, #tpu.memory_space<vmem>>, %arg8: memref<1x16x128xf32, #tpu.memory_space<vmem>>, %arg9: memref<18x64xf32, #tpu.memory_space<vmem>>, %arg10: memref<18x128xf32, #tpu.memory_space<vmem>>) attributes {dimension_semantics = [#tpu.dimension_semantics<parallel>], iteration_bounds = array<i64: 2>, scalar_prefetch = 0 : i64, scratch_operands = 2 : i64, tpu.core_type = #tpu.core_type<tc>, window_params = [{transform_indices = @transform_0, window_bounds = array<i64: 1, 16, 64>}, {pipeline_mode = #tpu.pipeline_mode<synchronous>, transform_indices = @transform_1, window_bounds = array<i64: 3, 64, 128>}, {pipeline_mode = #tpu.pipeline_mode<synchronous>, transform_indices = @transform_2, window_bounds = array<i64: 1, 128>}, {pipeline_mode = #tpu.pipeline_mode<synchronous>, transform_indices = @transform_3, window_bounds = array<i64: 3, 128, 128>}, {pipeline_mode = #tpu.pipeline_mode<synchronous>, transform_indices = @transform_4, window_bounds = array<i64: 1, 128>}, {pipeline_mode = #tpu.pipeline_mode<synchronous>, transform_indices = @transform_5, window_bounds = array<i64: 64, 128>}, {pipeline_mode = #tpu.pipeline_mode<synchronous>, transform_indices = @transform_6, window_bounds = array<i64: 1, 128>}, {transform_indices = @transform_7, window_bounds = array<i64: 1, 16, 128>}]} {
    %c0 = arith.constant 0 : index
    %c0_0 = arith.constant 0 : index
    %c0_1 = arith.constant 0 : index
    %0 = vector.load %arg1[%c0, %c0_0, %c0_1] : memref<1x16x64xf32, #tpu.memory_space<vmem>>, vector<1x16x64xf32>
    %1 = vector.shape_cast %0 : vector<1x16x64xf32> to vector<16x64xf32>
    %cst = arith.constant 0.000000e+00 : f32
    %2 = vector.broadcast %cst : f32 to vector<1x64xf32>
    %c0_2 = arith.constant 0 : index
    %c0_3 = arith.constant 0 : index
    %3 = vector.load %arg9[%c0_2, %c0_3] : memref<18x64xf32, #tpu.memory_space<vmem>>, vector<1x64xf32>
    tpu.vector_store %arg9[%c0_2, %c0_3], %2 {strides = array<i32>} : memref<18x64xf32, #tpu.memory_space<vmem>>, vector<1x64xf32>,
    %cst_4 = arith.constant 0.000000e+00 : f32
    %4 = vector.broadcast %cst_4 : f32 to vector<1x64xf32>
    %c17 = arith.constant 17 : index
    %c0_5 = arith.constant 0 : index
    %5 = vector.load %arg9[%c17, %c0_5] : memref<18x64xf32, #tpu.memory_space<vmem>>, vector<1x64xf32>
    tpu.vector_store %arg9[%c17, %c0_5], %4 {strides = array<i32>} : memref<18x64xf32, #tpu.memory_space<vmem>>, vector<1x64xf32>,
    %c1 = arith.constant 1 : index
    %c0_6 = arith.constant 0 : index
    %6 = vector.load %arg9[%c1, %c0_6] : memref<18x64xf32, #tpu.memory_space<vmem>>, vector<16x64xf32>
    tpu.vector_store %arg9[%c1, %c0_6], %1 {strides = array<i32>} : memref<18x64xf32, #tpu.memory_space<vmem>>, vector<16x64xf32>,
    %c0_7 = arith.constant 0 : index
    %c0_8 = arith.constant 0 : index
    %7 = vector.load %arg9[%c0_7, %c0_8] : memref<18x64xf32, #tpu.memory_space<vmem>>, vector<18x64xf32>
    %cst_9 = arith.constant 0.000000e+00 : f32
    %8 = vector.broadcast %cst_9 : f32 to vector<16x128xf32>
    %9 = vector.extract_strided_slice %7 {offsets = [0, 0], sizes = [16, 64], strides = [1, 1]} : vector<18x64xf32> to vector<16x64xf32>
    %10 = arith.truncf %9 : vector<16x64xf32> to vector<16x64xbf16>
    %c0_10 = arith.constant 0 : index
    %c0_11 = arith.constant 0 : index
    %c0_12 = arith.constant 0 : index
    %11 = vector.load %arg2[%c0_10, %c0_11, %c0_12] : memref<3x64x128xbf16, #tpu.memory_space<vmem>>, vector<1x64x128xbf16>
    %12 = vector.shape_cast %11 : vector<1x64x128xbf16> to vector<64x128xbf16>
    %cst_13 = arith.constant dense<0.000000e+00> : vector<16x128xf32>
    %13 = tpu.matmul %10, %12, %cst_13 {dimension_numbers = #tpu.dot_dimension_numbers<[1], [0], [0], [1], [0, 0, 1, 1], [], []>} : vector<16x64xbf16>, vector<64x128xbf16>, vector<16x128xf32> -> vector<16x128xf32>
    %14 = arith.addf %8, %13 : vector<16x128xf32>
    %15 = vector.extract_strided_slice %7 {offsets = [1, 0], sizes = [16, 64], strides = [1, 1]} : vector<18x64xf32> to vector<16x64xf32>
    %16 = arith.truncf %15 : vector<16x64xf32> to vector<16x64xbf16>
    %c1_14 = arith.constant 1 : index
    %c0_15 = arith.constant 0 : index
    %c0_16 = arith.constant 0 : index
    %17 = vector.load %arg2[%c1_14, %c0_15, %c0_16] : memref<3x64x128xbf16, #tpu.memory_space<vmem>>, vector<1x64x128xbf16>
    %18 = vector.shape_cast %17 : vector<1x64x128xbf16> to vector<64x128xbf16>
    %cst_17 = arith.constant dense<0.000000e+00> : vector<16x128xf32>
    %19 = tpu.matmul %16, %18, %cst_17 {dimension_numbers = #tpu.dot_dimension_numbers<[1], [0], [0], [1], [0, 0, 1, 1], [], []>} : vector<16x64xbf16>, vector<64x128xbf16>, vector<16x128xf32> -> vector<16x128xf32>
    %20 = arith.addf %14, %19 : vector<16x128xf32>
    %21 = vector.extract_strided_slice %7 {offsets = [2, 0], sizes = [16, 64], strides = [1, 1]} : vector<18x64xf32> to vector<16x64xf32>
    %22 = arith.truncf %21 : vector<16x64xf32> to vector<16x64xbf16>
    %c2 = arith.constant 2 : index
    %c0_18 = arith.constant 0 : index
    %c0_19 = arith.constant 0 : index
    %23 = vector.load %arg2[%c2, %c0_18, %c0_19] : memref<3x64x128xbf16, #tpu.memory_space<vmem>>, vector<1x64x128xbf16>
    %24 = vector.shape_cast %23 : vector<1x64x128xbf16> to vector<64x128xbf16>
    %cst_20 = arith.constant dense<0.000000e+00> : vector<16x128xf32>
    %25 = tpu.matmul %22, %24, %cst_20 {dimension_numbers = #tpu.dot_dimension_numbers<[1], [0], [0], [1], [0, 0, 1, 1], [], []>} : vector<16x64xbf16>, vector<64x128xbf16>, vector<16x128xf32> -> vector<16x128xf32>
    %26 = arith.addf %20, %25 : vector<16x128xf32>
    %c0_21 = arith.constant 0 : index
    %c0_22 = arith.constant 0 : index
    %27 = vector.load %arg3[%c0_21, %c0_22] : memref<1x128xf32, #tpu.memory_space<vmem>>, vector<1x128xf32>
    %28 = vector.broadcast %27 : vector<1x128xf32> to vector<16x128xf32>
    %29 = arith.addf %26, %28 : vector<16x128xf32>
    %cst_23 = arith.constant 0.000000e+00 : f32
    %30 = vector.broadcast %cst_23 : f32 to vector<16x128xf32>
    %31 = arith.maximumf %29, %30 : vector<16x128xf32>
    %cst_24 = arith.constant 0.000000e+00 : f32
    %32 = vector.broadcast %cst_24 : f32 to vector<1x128xf32>
    %c0_25 = arith.constant 0 : index
    %c0_26 = arith.constant 0 : index
    %33 = vector.load %arg10[%c0_25, %c0_26] : memref<18x128xf32, #tpu.memory_space<vmem>>, vector<1x128xf32>
    tpu.vector_store %arg10[%c0_25, %c0_26], %32 {strides = array<i32>} : memref<18x128xf32, #tpu.memory_space<vmem>>, vector<1x128xf32>,
    %cst_27 = arith.constant 0.000000e+00 : f32
    %34 = vector.broadcast %cst_27 : f32 to vector<1x128xf32>
    %c17_28 = arith.constant 17 : index
    %c0_29 = arith.constant 0 : index
    %35 = vector.load %arg10[%c17_28, %c0_29] : memref<18x128xf32, #tpu.memory_space<vmem>>, vector<1x128xf32>
    tpu.vector_store %arg10[%c17_28, %c0_29], %34 {strides = array<i32>} : memref<18x128xf32, #tpu.memory_space<vmem>>, vector<1x128xf32>,
    %c1_30 = arith.constant 1 : index
    %c0_31 = arith.constant 0 : index
    %36 = vector.load %arg10[%c1_30, %c0_31] : memref<18x128xf32, #tpu.memory_space<vmem>>, vector<16x128xf32>
    tpu.vector_store %arg10[%c1_30, %c0_31], %31 {strides = array<i32>} : memref<18x128xf32, #tpu.memory_space<vmem>>, vector<16x128xf32>,
    %c0_32 = arith.constant 0 : index
    %c0_33 = arith.constant 0 : index
    %37 = vector.load %arg10[%c0_32, %c0_33] : memref<18x128xf32, #tpu.memory_space<vmem>>, vector<18x128xf32>
    %cst_34 = arith.constant 0.000000e+00 : f32
    %38 = vector.broadcast %cst_34 : f32 to vector<16x128xf32>
    %39 = vector.extract_strided_slice %37 {offsets = [0, 0], sizes = [16, 128], strides = [1, 1]} : vector<18x128xf32> to vector<16x128xf32>
    %40 = arith.truncf %39 : vector<16x128xf32> to vector<16x128xbf16>
    %c0_35 = arith.constant 0 : index
    %c0_36 = arith.constant 0 : index
    %c0_37 = arith.constant 0 : index
    %41 = vector.load %arg4[%c0_35, %c0_36, %c0_37] : memref<3x128x128xbf16, #tpu.memory_space<vmem>>, vector<1x128x128xbf16>
    %42 = vector.shape_cast %41 : vector<1x128x128xbf16> to vector<128x128xbf16>
    %cst_38 = arith.constant dense<0.000000e+00> : vector<16x128xf32>
    %43 = tpu.matmul %40, %42, %cst_38 {dimension_numbers = #tpu.dot_dimension_numbers<[1], [0], [0], [1], [0, 0, 1, 1], [], []>} : vector<16x128xbf16>, vector<128x128xbf16>, vector<16x128xf32> -> vector<16x128xf32>
    %44 = arith.addf %38, %43 : vector<16x128xf32>
    %45 = vector.extract_strided_slice %37 {offsets = [1, 0], sizes = [16, 128], strides = [1, 1]} : vector<18x128xf32> to vector<16x128xf32>
    %46 = arith.truncf %45 : vector<16x128xf32> to vector<16x128xbf16>
    %c1_39 = arith.constant 1 : index
    %c0_40 = arith.constant 0 : index
    %c0_41 = arith.constant 0 : index
    %47 = vector.load %arg4[%c1_39, %c0_40, %c0_41] : memref<3x128x128xbf16, #tpu.memory_space<vmem>>, vector<1x128x128xbf16>
    %48 = vector.shape_cast %47 : vector<1x128x128xbf16> to vector<128x128xbf16>
    %cst_42 = arith.constant dense<0.000000e+00> : vector<16x128xf32>
    %49 = tpu.matmul %46, %48, %cst_42 {dimension_numbers = #tpu.dot_dimension_numbers<[1], [0], [0], [1], [0, 0, 1, 1], [], []>} : vector<16x128xbf16>, vector<128x128xbf16>, vector<16x128xf32> -> vector<16x128xf32>
    %50 = arith.addf %44, %49 : vector<16x128xf32>
    %51 = vector.extract_strided_slice %37 {offsets = [2, 0], sizes = [16, 128], strides = [1, 1]} : vector<18x128xf32> to vector<16x128xf32>
    %52 = arith.truncf %51 : vector<16x128xf32> to vector<16x128xbf16>
    %c2_43 = arith.constant 2 : index
    %c0_44 = arith.constant 0 : index
    %c0_45 = arith.constant 0 : index
    %53 = vector.load %arg4[%c2_43, %c0_44, %c0_45] : memref<3x128x128xbf16, #tpu.memory_space<vmem>>, vector<1x128x128xbf16>
    %54 = vector.shape_cast %53 : vector<1x128x128xbf16> to vector<128x128xbf16>
    %cst_46 = arith.constant dense<0.000000e+00> : vector<16x128xf32>
    %55 = tpu.matmul %52, %54, %cst_46 {dimension_numbers = #tpu.dot_dimension_numbers<[1], [0], [0], [1], [0, 0, 1, 1], [], []>} : vector<16x128xbf16>, vector<128x128xbf16>, vector<16x128xf32> -> vector<16x128xf32>
    %56 = arith.addf %50, %55 : vector<16x128xf32>
    %c0_47 = arith.constant 0 : index
    %c0_48 = arith.constant 0 : index
    %57 = vector.load %arg5[%c0_47, %c0_48] : memref<1x128xf32, #tpu.memory_space<vmem>>, vector<1x128xf32>
    %58 = vector.broadcast %57 : vector<1x128xf32> to vector<16x128xf32>
    %59 = arith.addf %56, %58 : vector<16x128xf32>
    %cst_49 = arith.constant 0.000000e+00 : f32
    %60 = vector.broadcast %cst_49 : f32 to vector<16x128xf32>
    %61 = arith.maximumf %59, %60 : vector<16x128xf32>
    %62 = arith.truncf %1 : vector<16x64xf32> to vector<16x64xbf16>
    %c0_50 = arith.constant 0 : index
    %c0_51 = arith.constant 0 : index
    %63 = vector.load %arg6[%c0_50, %c0_51] : memref<64x128xbf16, #tpu.memory_space<vmem>>, vector<64x128xbf16>
    %cst_52 = arith.constant dense<0.000000e+00> : vector<16x128xf32>
    %64 = tpu.matmul %62, %63, %cst_52 {dimension_numbers = #tpu.dot_dimension_numbers<[1], [0], [0], [1], [0, 0, 1, 1], [], []>} : vector<16x64xbf16>, vector<64x128xbf16>, vector<16x128xf32> -> vector<16x128xf32>
    %c0_53 = arith.constant 0 : index
    %c0_54 = arith.constant 0 : index
    %65 = vector.load %arg7[%c0_53, %c0_54] : memref<1x128xf32, #tpu.memory_space<vmem>>, vector<1x128xf32>
    %66 = vector.broadcast %65 : vector<1x128xf32> to vector<16x128xf32>
    %67 = arith.addf %64, %66 : vector<16x128xf32>
    %68 = arith.addf %61, %67 : vector<16x128xf32>
    %cst_55 = arith.constant 0.000000e+00 : f32
    %69 = vector.broadcast %cst_55 : f32 to vector<16x128xf32>
    %70 = arith.maximumf %68, %69 : vector<16x128xf32>
    %c0_56 = arith.constant 0 : index
    %c0_57 = arith.constant 0 : index
    %c0_58 = arith.constant 0 : index
    %71 = vector.load %arg8[%c0_56, %c0_57, %c0_58] : memref<1x16x128xf32, #tpu.memory_space<vmem>>, vector<1x16x128xf32>
    %72 = vector.shape_cast %71 : vector<1x16x128xf32> to vector<16x128xf32>
    %73 = vector.shape_cast %70 : vector<16x128xf32> to vector<1x16x128xf32>
    tpu.vector_store %arg8[%c0_56, %c0_57, %c0_58], %73 {strides = array<i32>} : memref<1x16x128xf32, #tpu.memory_space<vmem>>, vector<1x16x128xf32>,
    return
  }
  func.func @transform_0(%arg0: i32) -> (i32, i32, i32) {
    %c0_i32 = arith.constant 0 : i32
    %c0_i32_0 = arith.constant 0 : i32
    %c0_i32_1 = arith.constant 0 : i32
    return %arg0, %c0_i32, %c0_i32_0 : i32, i32, i32
  }
  func.func @transform_1(%arg0: i32) -> (i32, i32, i32) {
    %c0_i32 = arith.constant 0 : i32
    %c0_i32_0 = arith.constant 0 : i32
    %c0_i32_1 = arith.constant 0 : i32
    %c0_i32_2 = arith.constant 0 : i32
    return %c0_i32, %c0_i32_0, %c0_i32_1 : i32, i32, i32
  }
  func.func @transform_2(%arg0: i32) -> (i32, i32) {
    %c0_i32 = arith.constant 0 : i32
    %c0_i32_0 = arith.constant 0 : i32
    %c0_i32_1 = arith.constant 0 : i32
    return %c0_i32, %c0_i32_0 : i32, i32
  }
  func.func @transform_3(%arg0: i32) -> (i32, i32, i32) {
    %c0_i32 = arith.constant 0 : i32
    %c0_i32_0 = arith.constant 0 : i32
    %c0_i32_1 = arith.constant 0 : i32
    %c0_i32_2 = arith.constant 0 : i32
    return %c0_i32, %c0_i32_0, %c0_i32_1 : i32, i32, i32
  }
  func.func @transform_4(%arg0: i32) -> (i32, i32) {
    %c0_i32 = arith.constant 0 : i32
    %c0_i32_0 = arith.constant 0 : i32
    %c0_i32_1 = arith.constant 0 : i32
    return %c0_i32, %c0_i32_0 : i32, i32
  }
  func.func @transform_5(%arg0: i32) -> (i32, i32) {
    %c0_i32 = arith.constant 0 : i32
    %c0_i32_0 = arith.constant 0 : i32
    %c0_i32_1 = arith.constant 0 : i32
    return %c0_i32, %c0_i32_0 : i32, i32
  }
  func.func @transform_6(%arg0: i32) -> (i32, i32) {
    %c0_i32 = arith.constant 0 : i32
    %c0_i32_0 = arith.constant 0 : i32
    %c0_i32_1 = arith.constant 0 : i32
    return %c0_i32, %c0_i32_0 : i32, i32
  }
  func.func @transform_7(%arg0: i32) -> (i32, i32, i32) {
    %c0_i32 = arith.constant 0 : i32
    %c0_i32_0 = arith.constant 0 : i32
    %c0_i32_1 = arith.constant 0 : i32
    return %arg0, %c0_i32, %c0_i32_0 : i32, i32, i32
  }
}

</mosaic_0001>

<bundles_post_ra>
// kernel: tpu_custom_call.1
= control target key start
LH: loop header
LB: loop body
LE: loop exit
PB: predicated region body
PF: predicated region fallthrough
CT: control target
= control target key end

     0   :  { %12 = vsyncpa [#allocation5], 0  ;;  %s2133_s0 = inlined_call_operand.hbm [shape: f32[2,16,64], index: 0, kind: input, shape index: {}]   ;;  %s2134_s1 = inlined_call_operand.hbm [shape: bf16[3,64,128], index: 1, kind: input, shape index: {}]   ;;  %s2135_s2 = inlined_call_operand.vmem [shape: f32[1,128], index: 2, kind: input, shape index: {}]   ;;  %s2136_s3 = inlined_call_operand.hbm [shape: bf16[3,128,128], index: 3, kind: input, shape index: {}]   ;;  %s2137_s4 = inlined_call_operand.vmem [shape: f32[1,128], index: 4, kind: input, shape index: {}]   ;;  %s2138_s5 = inlined_call_operand.hbm [shape: bf16[64,128], index: 5, kind: input, shape index: {}]   ;;  %s2139_s6 = inlined_call_operand.vmem [shape: f32[1,128], index: 6, kind: input, shape index: {}]   ;;  %s2140_s7 = inlined_call_operand.hbm [shape: f32[2,16,128], index: 7, kind: output, shape index: {}]  }
   0x1   :  { %14 = vsyncpa [#allocation5 + $0x1], 0 }
   0x2   :  { %15 = vsyncpa [#allocation8], 0 }
   0x3   :  { %16 = vsyncpa [#allocation11], 0 }
   0x4   :  { %17 = vsyncpa [#allocation6], 0 }
   0x5   :  { %19 = vsyncpa [#allocation6 + $0x1], 0  ;;  %s1772_s24 = smov 0   ;;  %s1774_s25 = smov 0  }
   0x6   :  { %s1776_s26 = smov 0   ;;  %s1778_s27 = smov 0  }
   0x7 LB: > { %s1793_s28 = sadd.s32 4294967295, %s1717_s27   ;;  %s1180_s29 = sadd.s32 4294967294, %s1717_s27   ;;  %s1717_s27 = sphi %s1778_s27, %s2166_s27   ;;  %s1713_s26 = sphi %s1776_s26, %s2165_s26   ;;  %s1709_s25 = sphi %s1774_s25, %s2164_s25   ;;  %s1705_s24 = sphi %s1772_s24, %s2163_s24  }
   0x8   : > { %p45_p0 = scmp.ne.s32.totalorder %s1709_s25, %s1705_s24  ;;  %p2141_p1 = scmp.eq.s32.totalorder %s1793_s28, 0 }
   0x9   : > { %p201_p3 = scmp.eq.s32.totalorder %s1180_s29, 1  ;;  %p1181_p5 = scmp.ge.s32.totalorder %s1717_s27, 1 }
   0xa   : > { %p1802_p4 = por %p2141_p1, %p45_p0  ;;  %p208_p7 = scmp.lt.s32.totalorder %s1717_s27, 3 }
   0xb   : > { %p1807_p6 = por %p201_p3, %p45_p0  ;;  %s1719_s10 = smov [#allocation7]  }
   0xc   : > { %s2145_s30 = scalar_select %p1802_p4, 1, 0 }
   0xd   : > { %s2146_s8 = scalar_select %p1807_p6, 1, 0 }
   0xe   : > { %p1812_p8 = pnand %p1181_p5, %p208_p7  ;;  %s220_s11 = sshll.u32 %s1719_s10, 4  ;;  %s1816_s11 = int_to_ptr.vmem [resolvable:$true] %s220_s11 }
   0xf   : > { %2147 = sst [smem:[#allocation17_spill]] %s2146_s8  ;;  %s1720_s13 = smov [#allocation9]  }
  0x10   : > { %s2148_s9 = scalar_select %p1812_p8, 1, 0 }
  0x11   : > { %p1420_p9 = pneg %p1812_p8  ;;  %s236_s14 = sshll.u32 %s1720_s13, 4  ;;  %s1827_s14 = int_to_ptr.vmem [resolvable:$true] %s236_s14 }
  0x12   : > { %s1721_s15 = smov [#allocation10]   ;;  %s1529_s19 = scalar_lea.hbm %s2134_s1, 1536 }
  0x13   : > { %p1823_p11 = pnand %p1420_p9, %p2141_p1  ;;  %s1829_s16 = sshll.u32 %s1721_s15, 4  ;;  %s253_s16 = int_to_ptr.vmem [resolvable:$true] %s1829_s16 }
  0x14   : > { %p1530_p12 = scmp.ne.s32.totalorder %s2134_s1, %s1529_s19  ;;  %p1536_p5 = scmp.lt.u32.totalorder %s1529_s19, %s2134_s1 }
  0x15   : > { %p1839_p13 = pneg %p1823_p11 }
  0x17   : > { %p1532_p0 = pnand %p1839_p13, %p1530_p12 }
  0x19   : > { %p1533_p3 = pneg %p1532_p0 }
  0x1b   : > { %p1538_p7 = pnand %p1536_p5, %p1533_p3 }
  0x1d   : > { %1541 = shalt.err (!%p1538_p7)
}
  0x1e   : > { %s1542_s10 = scalar_lea.vmem %s1816_s11, 1536  ;;  %p1550_p2 = scmp.lt.s32.totalorder %s1816_s11, %s1816_s11 }
  0x1f   : > { %p1543_p9 = scmp.ne.s32.totalorder %s1816_s11, %s1542_s10  ;;  %p1551_p6 = scmp.lt.s32.totalorder %s1542_s10, %s1542_s10 }
  0x21   : > { %p1545_p10 = pnand %p1543_p9, %p1839_p13  ;;  %p1552_p12 = por %p1551_p6, %p1550_p2 }
  0x23   : > { %p1546_p1 = pneg %p1545_p10 }
  0x25   : > { %p1553_p0 = pnand %p1552_p12, %p1546_p1 }
  0x27   : > { %1556 = shalt.err (!%p1553_p0)
}
  0x28   : > { %s1722_s13 = smov 64   ;;  %s1723_s15 = smov 4  }
  0x29   : > { %1423 = dma.hbm_to_vmem [thread:$0]  (!%p1823_p11), %s2134_s1, 1536, %s1816_s11, [#allocation8], %s1722_s13, %s1722_s13, %s1723_s15  }
  0x2a   : > { %s1557_s21 = scalar_lea.hbm %s2136_s3, 3072 }
  0x2b   : > { %p1558_p1 = scmp.ne.s32.totalorder %s2136_s3, %s1557_s21  ;;  %p1564_p10 = scmp.lt.u32.totalorder %s1557_s21, %s2136_s3 }
  0x2d   : > { %p1560_p2 = pnand %p1558_p1, %p1839_p13 }
  0x2f   : > { %p1561_p6 = pneg %p1560_p2 }
  0x31   : > { %p1566_p3 = pnand %p1564_p10, %p1561_p6 }
  0x33   : > { %1569 = shalt.err (!%p1566_p3)
}
  0x34   : > { %s1570_s11 = scalar_lea.vmem %s1827_s14, 3072  ;;  %p1578_p12 = scmp.lt.s32.totalorder %s1827_s14, %s1827_s14 }
  0x35   : > { %p1571_p5 = scmp.ne.s32.totalorder %s1827_s14, %s1570_s11  ;;  %p1579_p0 = scmp.lt.s32.totalorder %s1570_s11, %s1570_s11 }
  0x37   : > { %p1573_p7 = pnand %p1571_p5, %p1839_p13  ;;  %p1580_p1 = por %p1579_p0, %p1578_p12 }
  0x39   : > { %p1574_p9 = pneg %p1573_p7 }
  0x3b   : > { %p1581_p2 = pnand %p1580_p1, %p1574_p9 }
  0x3d   : > { %1584 = shalt.err (!%p1581_p2)
}
  0x3e   : > { %1426 = dma.hbm_to_vmem [thread:$0]  (!%p1823_p11), %s2136_s3, 3072, %s1827_s14, [#allocation8], %s1722_s13, %s1722_s13, %s1723_s15  }
  0x3f   : > { %s1585_s20 = scalar_lea.hbm %s2138_s5, 512 }
  0x40   : > { %p1586_p6 = scmp.ne.s32.totalorder %s2138_s5, %s1585_s20  ;;  %p1592_p5 = scmp.lt.u32.totalorder %s1585_s20, %s2138_s5 }
  0x42   : > { %p1588_p10 = pnand %p1586_p6, %p1839_p13 }
  0x44   : > { %p1589_p3 = pneg %p1588_p10 }
  0x46   : > { %p1594_p7 = pnand %p1592_p5, %p1589_p3 }
  0x48   : > { %1597 = shalt.err (!%p1594_p7)
}
  0x49   : > { %s1598_s11 = scalar_lea.vmem %s253_s16, 512  ;;  %p1606_p1 = scmp.lt.s32.totalorder %s253_s16, %s253_s16 }
  0x4a   : > { %p1599_p9 = scmp.ne.s32.totalorder %s253_s16, %s1598_s11  ;;  %p1607_p2 = scmp.lt.s32.totalorder %s1598_s11, %s1598_s11 }
  0x4c   : > { %p1601_p12 = pnand %p1599_p9, %p1839_p13  ;;  %p1608_p4 = por %p1607_p2, %p1606_p1 }
  0x4e   : > { %p1602_p0 = pneg %p1601_p12 }
  0x50   : > { %p1609_p8 = pnand %p1608_p4, %p1602_p0 }
  0x52   : > { %1612 = shalt.err (!%p1609_p8)
}
  0x53   : > { %1429 = dma.hbm_to_vmem [thread:$0]  (!%p1823_p11), %s2138_s5, 512, %s253_s16, [#allocation11], %s1722_s13, %s1722_s13, %s1723_s15  }
  0x54   : > { %s1912_s22 = sadd.s32 1, %s1717_s27   ;;  %s32_s17 = sadd.s32 1, %s1713_s26 }
  0x55   : > { %s29_s12 = ssub.s32 %s1717_s27, %s1912_s22  ;;  %p39_p8 = scmp.ne.s32.totalorder %s1713_s26, %s1709_s25 }
  0x56   : > { %p30_p4 = scmp.eq.s32.totalorder %s29_s12, 0  ;;  %p40_p13 = scmp.eq.s32.totalorder %s1717_s27, 0 }
  0x57   : > { %p1441_p6 = scmp.lt.s32.totalorder %s1717_s27, 2  ;;  %p2151_p3 = scmp.eq.s32.totalorder %s1793_s28, 1 }
  0x58   : > { %s1922_s18 = scalar_select %p30_p4, %s1713_s26, %s32_s17  }
  0x59   : > { %p41_p10 = por %p40_p13, %p39_p8  ;;  %p1926_p5 = por %p2151_p3, %p39_p8 }
  0x5a   : > { %s269_s20 = sand.u32 1, %s1713_s26   ;;  %s1247_s21 = sshll.u32 %s1717_s27, 8 }
  0x5b   : > { %s1186_s16 = sshll.u32 %s269_s20, 4  ;;  %s1935_s23 = scalar_lea.hbm %s2133_s0, %s1247_s21 }
  0x5c   : > { %s273_s29 = scalar_lea.vmem [#allocation4], %s1186_s16  ;;  %p1937_p11 = pnand %p1441_p6, %p41_p10 }
  0x5d   : > { %s280_s10 = sshll.u32 %s273_s29, 4  ;;  %s1943_s14 = scalar_lea.sflag [#allocation5], %s269_s20  ;;  %s1941_s10 = int_to_ptr.vmem [resolvable:$true] %s280_s10 }
  0x5e   : > { %s1613_s8 = scalar_lea.hbm %s1935_s23, 256  ;;  %p1615_p9 = pneg %p1937_p11 }
  0x5f   : > { %p1614_p7 = scmp.ne.s32.totalorder %s1935_s23, %s1613_s8  ;;  %s1618_s21 = scalar_lea.hbm %s2133_s0, 512 }
  0x60   : > { %p1619_p1 = scmp.lt.u32.totalorder %s1935_s23, %s2133_s0  ;;  %p1620_p2 = scmp.lt.u32.totalorder %s1618_s21, %s1613_s8 }
  0x61   : > { %p1616_p12 = pnand %p1615_p9, %p1614_p7  ;;  %p1622_p8 = scmp.lt.u32.totalorder %s1613_s8, %s1935_s23 }
  0x62   : > { %p1621_p4 = por %p1620_p2, %p1619_p1 }
  0x63   : > { %p1617_p0 = pneg %p1616_p12 }
  0x64   : > { %p1623_p13 = por %p1622_p8, %p1621_p4 }
  0x66   : > { %p1624_p6 = pnand %p1623_p13, %p1617_p0 }
  0x68   : > { %1627 = shalt.err (!%p1624_p6)
}
  0x69   : > { %s1628_s20 = scalar_lea.vmem %s1941_s10, 256  ;;  %s1724_s15 = smov [#allocation4]  }
  0x6a   : > { %p1629_p10 = scmp.ne.s32.totalorder %s1941_s10, %s1628_s20  ;;  %s1633_s29 = sshll.u32 %s1724_s15, 4  ;;  %s1634_s29 = int_to_ptr.vmem [resolvable:$false] %s1633_s29 }
  0x6b   : > { %s1635_s12 = scalar_lea.vmem %s1634_s29, 512  ;;  %p1636_p12 = scmp.lt.s32.totalorder %s1941_s10, %s1634_s29 }
  0x6c   : > { %p1631_p3 = pnand %p1629_p10, %p1615_p9  ;;  %p1637_p1 = scmp.lt.s32.totalorder %s1635_s12, %s1628_s20 }
  0x6e   : > { %p1632_p7 = pneg %p1631_p3  ;;  %p1638_p2 = por %p1637_p1, %p1636_p12 }
  0x70   : > { %p1639_p4 = pnand %p1638_p2, %p1632_p7 }
  0x72   : > { %1642 = shalt.err (!%p1639_p4)
}
  0x73   : > { %s1725_s8 = smov 128   ;;  %s1726_s17 = smov 8  }
  0x74   : > { %1433 = dma.hbm_to_vmem [thread:$0]  (!%p1937_p11), %s1935_s23, 256, %s1941_s10, %s1943_s14, %s1725_s8, %s1725_s8, %s1726_s17  }
  0x75   : > { %p2154_p9 = scmp.ne.s32.totalorder %s2148_s9, 0 }
  0x76   : > { %s1974_s21 = sand.u32 (!%p2154_p9), 1, %s1709_s25   ;;  %p2155_p0 = scmp.ne.s32.totalorder (!%p2154_p9), %s2145_s30, 0 }
  0x77   : > { %292 = sbr.rel (%p2154_p9) target bundleno = 680 (0x2a8), region = 48  ;;  %s1190_s16 = sshll.u32 (!%p2154_p9), %s1974_s21, 4 }
  0x78   : > { %s295_s13 = scalar_lea.sflag (!%p2154_p9), [#allocation5], %s1974_s21  ;;  %s1980_s20 = scalar_lea.vmem (!%p2154_p9), [#allocation4], %s1190_s16 }
  0x7e   : > { %1688 = dma.done.wait (%p2155_p0), %s295_s13, 256  }
  0x7f   : > { %1690 = vsyncadd (%p2155_p0), %s295_s13, 4294967040  ;;  %p2156_p11 = scmp.eq.s32.totalorder %s1793_s28, 0 }
  0x81   : > { %1692 = dma.done.wait (%p2156_p11), [#allocation8], 4608   ;;  %p2157_p8 = pmov %p2156_p11 }
  0x83   : > { %1694 = vsyncadd (%p2157_p8), [#allocation8], 4294962688  ;;  %p2158_p13 = pmov %p2157_p8 }
  0x84   : > { %p2159_p6 = pmov %p2157_p8 }
  0x85   : > { %1696 = dma.done.wait (%p2158_p13), [#allocation11], 512  }
  0x86   : > { %1698 = vsyncadd (%p2159_p6), [#allocation11], 4294966784  ;;  %vm344_vm0 = vcmask 516096   ;;  %v1727_v0 = vmov 0.0   ;;  %vm1728_vm1 = vmmov 0   ;;  %v1489_v1 = vld [vmem:[#allocation7 + $0x20] sm:$0xff]  }
  0x87   : > { %1296 = vmatprep.subr.bf16.mxu0 %v1727_v0  ;;  %616 = vst [vmem:[#allocation3] sm:$0x1] %v1727_v0  ;;  %617 = vst [vmem:[#allocation3 + $0x11] sm:$0x1] %v1727_v0  ;;  %1308 = vmatprep.subr.bf16.mxu1 %v1727_v0  ;;  %v1490_v2 = vld [vmem:[#allocation7] sm:$0xff]   ;;  %v1491_v3 = vld [vmem:[#allocation7 + $0x28] sm:$0xff]  }
  0x88   : > { %345 = vst.msk [vmem:[#allocation2] sm:$0x1] %vm344_vm0, %v1727_v0  ;;  %346 = vst.msk [vmem:[#allocation2 + $0x11] sm:$0x1] %vm344_vm0, %v1727_v0  ;;  %1304 = vmatprep.mubr.msk.bf16.mxu0 %vm1728_vm1, %v1727_v0  ;;  %1316 = vmatprep.mubr.msk.bf16.mxu1 %vm1728_vm1, %v1727_v0  ;;  %v1492_v4 = vld [vmem:[#allocation7 + $0x8] sm:$0xff]   ;;  %v1493_v5 = vld [vmem:[#allocation7 + $0x30] sm:$0xff]  }
  0x89   : > { %1297 = vmatpush3.bf16.msra.mxu0 %v1489_v1  ;;  %1309 = vmatpush3.bf16.msra.mxu1 %v1490_v2  ;;  %vm347_vm2 = vcmask 523264   ;;  %v1494_v6 = vld [vmem:[#allocation7 + $0x10] sm:$0xff]   ;;  %v2012_v8 = vld [vmem:[%s1980_s20 + $0x8] sm:$0xff]  ;;  %vm372_vm3 = vsmask.f32 7424  ;;  %v1497_v21 = vld [vmem:[#allocation7 + $0x40] sm:$0xff]  }
  0x8a   : > { %1298 = vmatprep.subr.bf16.mxu0 %v1727_v0  ;;  %1310 = vmatprep.subr.bf16.mxu1 %v1727_v0  ;;  %v2009_v7 = vld [vmem:[%s1980_s20] sm:$0xff]  ;;  %349 = vst.msk [vmem:[#allocation2 + $0x9] sm:$0xff] %vm347_vm2, %v2012_v8  ;;  %v1495_v9 = vld [vmem:[#allocation7 + $0x38] sm:$0xff]   ;;  %v1498_v24 = vld [vmem:[#allocation7 + $0x48] sm:$0xff]   ;;  %vm531_vm4 = vcmask 1046528   ;;  %s340_s15 = scalar_lea.vmem [#allocation12], %s1190_s16 }
  0x8b   : > { %348 = vst.msk [vmem:[#allocation2 + $0x1] sm:$0xff] %vm347_vm2, %v2009_v7  ;;  %v1496_v10 = vld [vmem:[#allocation7 + $0x18] sm:$0xff]   ;;  %v1499_v25 = vld [vmem:[#allocation7 + $0x50] sm:$0xff]   ;;  %v1501_v30 = vld [vmem:[#allocation9] sm:$0xff]   ;;  %s1078_s29 = sshll.u32 %s340_s15, 4  ;;  %s1248_s12 = sshll.u32 %s1793_s28, 8  ;;  %s2084_s29 = int_to_ptr.vmem [resolvable:$true] %s1078_s29 }
  0x8c   : > { %v1500_v26 = vld [vmem:[#allocation7 + $0x58] sm:$0xff]   ;;  %v1503_v31 = vld [vmem:[#allocation9 + $0x40] sm:$0xff]   ;;  %v1502_v32 = vld [vmem:[#allocation9 + $0x8] sm:$0xff]   ;;  %s2089_s13 = scalar_lea.hbm %s2140_s7, %s1248_s12  ;;  %s1065_s16 = scalar_lea.sflag [#allocation6], %s1974_s21 }
  0x8d   : > { %1299 = vmatpush3.bf16.msra.mxu0 %v1491_v3  ;;  %1311 = vmatpush3.bf16.msra.mxu1 %v1492_v4  ;;  %v1505_v33 = vld [vmem:[#allocation9 + $0x48] sm:$0xff]   ;;  %v1504_v34 = vld [vmem:[#allocation9 + $0x10] sm:$0xff]   ;;  %v1506_v35 = vld [vmem:[#allocation9 + $0x18] sm:$0xff]   ;;  %s1643_s20 = scalar_lea.vmem %s2084_s29, 256  ;;  %s1729_s28 = smov [#allocation12]  }
  0x8e   : > { %1300 = vmatprep.subr.bf16.mxu0 %v1727_v0  ;;  %1312 = vmatprep.subr.bf16.mxu1 %v1727_v0  ;;  %v1507_v36 = vld [vmem:[#allocation9 + $0x50] sm:$0xff]   ;;  %v1508_v37 = vld [vmem:[#allocation9 + $0x20] sm:$0xff]   ;;  %v1509_v38 = vld [vmem:[#allocation9 + $0x58] sm:$0xff]   ;;  %p1644_p10 = scmp.ne.s32.totalorder %s2084_s29, %s1643_s20  ;;  %s1647_s30 = sshll.u32 %s1729_s28, 4  ;;  %s1648_s30 = int_to_ptr.vmem [resolvable:$false] %s1647_s30 }
  0x8f   : > { %v1510_v39 = vld [vmem:[#allocation9 + $0x28] sm:$0xff]   ;;  %v1511_v40 = vld [vmem:[#allocation9 + $0x60] sm:$0xff]   ;;  %v1512_v41 = vld [vmem:[#allocation9 + $0x30] sm:$0xff]   ;;  %s1649_s9 = scalar_lea.vmem %s1648_s30, 512  ;;  %p1650_p12 = scmp.lt.s32.totalorder %s2084_s29, %s1648_s30 }
  0x90   : > { %v1513_v42 = vld [vmem:[#allocation9 + $0x68] sm:$0xff]   ;;  %v1514_v43 = vld [vmem:[#allocation9 + $0x38] sm:$0xff]   ;;  %v1515_v44 = vld [vmem:[#allocation9 + $0x70] sm:$0xff]   ;;  %p1645_p3 = pnand %p1644_p10, %p1926_p5  ;;  %p1651_p1 = scmp.lt.s32.totalorder %s1649_s9, %s1643_s20 }
  0x91   : > { %1301 = vmatpush3.bf16.msra.mxu0 %v1493_v5  ;;  %1313 = vmatpush3.bf16.msra.mxu1 %v1494_v6  ;;  %v352_v13 = vld [vmem:[#allocation2 + $0x10] sm:$0x3]  ;;  %v1516_v45 = vld [vmem:[#allocation9 + $0x78] sm:$0xff]   ;;  %v1210_v57 = vld [vmem:[%s2135_s2] ss:$0 sm:$0xff] }
  0x92   : > { %1302 = vmatprep.subr.bf16.mxu0 %v1727_v0  ;;  %1314 = vmatprep.subr.bf16.mxu1 %v1727_v0  ;;  %v350_v11 = vld [vmem:[#allocation2] sm:$0xff]  ;;  %v351_v12 = vld [vmem:[#allocation2 + $0x8] sm:$0xff]  ;;  %v362_v15 = vpack.c.bf16 %v352_v13, %v352_v13  ;;  %v1522_v4 = vld [vmem:[#allocation10] sm:$0xff]   ;;  %p1646_p7 = pneg %p1645_p3  ;;  %p1652_p2 = por %p1651_p1, %p1650_p12 }
  0x93   : > { %v353_v14 = vpack.c.bf16 %v351_v12, %v350_v11 }
  0x94   : > { %v381_v18 = vshll.u32 %v362_v15, 16  ;;  %v533_v28 = vrot.slane %v362_v15, 1  ;;  %p1653_p4 = pnand %p1652_p2, %p1646_p7 }
  0x95   : > { %1303 = vmatpush3.bf16.msra.mxu0 %v1495_v9  ;;  %1315 = vmatpush3.bf16.msra.mxu1 %v1496_v10  ;;  %v374_v16 = vshrl.u32 %v353_v14, 16  ;;  %v376_v17 = vshll.u32 %v353_v14, 16  ;;  %v532_v27 = vrot.slane %v353_v14, 1 }
  0x96   : > { %1320 = vmatprep.subr.bf16.mxu0 %v1727_v0  ;;  %1332 = vmatprep.subr.bf16.mxu1 %v1727_v0  ;;  %v383_v20 = vrot.slane %v381_v18, 1 }
  0x97   : > { %v378_v19 = vrot.slane %v376_v17, 1  ;;  %v534_v29 = vsel %vm531_vm4, %v532_v27, %v533_v28  ;;  %v1521_v27 = vld [vmem:[#allocation9 + $0xa0] sm:$0xff]   ;;  %v1523_v28 = vld [vmem:[#allocation9 + $0xa8] sm:$0xff]  }
  0x98   : > { %1317 = vmatmul.mubr.msk.bf16.vlgmr.msra.gmra.mrb[0].mxu1 %vm347_vm2, %v353_v14  ;;  %v1524_v14 = vld [vmem:[#allocation10 + $0x8] sm:$0xff]  }
  0x99   : > { %1348 = vmatprep.mubr.msk.bf16.mxu1 %vm1728_vm1, %v1727_v0  ;;  %v379_v22 = vor.u32 %v378_v19, %v374_v16  ;;  %1333 = vmatpush3.bf16.msra.mxu1 %v1503_v31  ;;  %v1517_v19 = vld [vmem:[#allocation9 + $0x80] sm:$0xff]  }
  0x9a   : > { %1334 = vmatprep.subr.bf16.mxu1 %v1727_v0 }
  0x9b   : > { %v384_v23 = vsel %vm372_vm3, %v379_v22, %v383_v20  ;;  %v1526_v20 = vld [vmem:[#allocation10 + $0x10] sm:$0xff]   ;;  %v1518_v22 = vld [vmem:[#allocation9 + $0x88] sm:$0xff]  }
  0x9c   : > { %1305 = vmatmul.mubr.msk.bf16.vlgmr.msra.gmra.mrb[0].mxu0 %vm347_vm2, %v384_v23  ;;  %v1528_v23 = vld [vmem:[#allocation10 + $0x18] sm:$0xff]  }
  0x9d   : > { %1321 = vmatpush3.bf16.msra.mxu0 %v1497_v21  ;;  %1328 = vmatprep.mubr.msk.bf16.mxu0 %vm1728_vm1, %v1727_v0 }
  0x9e   : > { %1322 = vmatprep.subr.bf16.mxu0 %v1727_v0  ;;  %1335 = vmatpush3.bf16.msra.mxu1 %v1505_v33 }
  0x9f   : > { %1336 = vmatprep.subr.bf16.mxu1 %v1727_v0 }
  0xa1   : > { %1323 = vmatpush3.bf16.msra.mxu0 %v1498_v24  ;;  %v1519_v24 = vld [vmem:[#allocation9 + $0x90] sm:$0xff]  }
  0xa2   : > { %1324 = vmatprep.subr.bf16.mxu0 %v1727_v0  ;;  %1337 = vmatpush3.bf16.msra.mxu1 %v1507_v36 }
  0xa3   : > { %1338 = vmatprep.subr.bf16.mxu1 %v1727_v0 }
  0xa5   : > { %1325 = vmatpush3.bf16.msra.mxu0 %v1499_v25  ;;  %v974_v25 = vpack.c.bf16 %v2012_v8, %v2009_v7  ;;  %v1527_v7 = vld [vmem:[#allocation9 + $0xb8] sm:$0xff]  }
  0xa6   : > { %1326 = vmatprep.subr.bf16.mxu0 %v1727_v0  ;;  %1339 = vmatpush3.bf16.msra.mxu1 %v1509_v38 }
  0xa7   : > { %1340 = vmatprep.subr.bf16.mxu1 %v1727_v0 }
  0xa9   : > { %1327 = vmatpush3.bf16.msra.mxu0 %v1500_v26  ;;  %v1520_v26 = vld [vmem:[#allocation9 + $0x98] sm:$0xff]  }
  0xaa   : > { %1352 = vmatprep.subr.bf16.mxu0 %v1727_v0  ;;  %1341 = vmatpush3.bf16.msra.mxu1 %v1511_v40 }
  0xab   : > { %1342 = vmatprep.subr.bf16.mxu1 %v1727_v0 }
  0xac   : > { %1329 = vmatmul.mubr.msk.bf16.vlgmr.msra.gmra.mrb[4].mxu0 %vm347_vm2, %v534_v29  ;;  %v1525_v29 = vld [vmem:[#allocation9 + $0xb0] sm:$0xff]  }
  0xad   : > { %1368 = vmatprep.mubr.msk.bf16.mxu0 %vm1728_vm1, %v1727_v0  ;;  %1353 = vmatpush3.bf16.msra.mxu0 %v1501_v30 }
  0xae   : > { %1354 = vmatprep.subr.bf16.mxu0 %v1727_v0  ;;  %1343 = vmatpush3.bf16.msra.mxu1 %v1513_v42 }
  0xaf   : > { %1344 = vmatprep.subr.bf16.mxu1 %v1727_v0 }
  0xb1   : > { %1355 = vmatpush3.bf16.msra.mxu0 %v1502_v32 }
  0xb2   : > { %1356 = vmatprep.subr.bf16.mxu0 %v1727_v0  ;;  %1345 = vmatpush3.bf16.msra.mxu1 %v1515_v44 }
  0xb3   : > { %1346 = vmatprep.subr.bf16.mxu1 %v1727_v0 }
  0xb5   : > { %1357 = vmatpush3.bf16.msra.mxu0 %v1504_v34 }
  0xb6   : > { %1358 = vmatprep.subr.bf16.mxu0 %v1727_v0  ;;  %1347 = vmatpush3.bf16.msra.mxu1 %v1516_v45 }
  0xb7   : > { %1372 = vmatprep.subr.bf16.mxu1 %v1727_v0 }
  0xb9   : > { %1359 = vmatpush3.bf16.msra.mxu0 %v1506_v35 }
  0xba   : > { %1360 = vmatprep.subr.bf16.mxu0 %v1727_v0 }
  0xbd   : > { %1361 = vmatpush3.bf16.msra.mxu0 %v1508_v37 }
  0xbe   : > { %1362 = vmatprep.subr.bf16.mxu0 %v1727_v0 }
  0xc1   : > { %1363 = vmatpush3.bf16.msra.mxu0 %v1510_v39 }
  0xc2   : > { %1364 = vmatprep.subr.bf16.mxu0 %v1727_v0 }
  0xc5   : > { %1365 = vmatpush3.bf16.msra.mxu0 %v1512_v41 }
  0xc6   : > { %1366 = vmatprep.subr.bf16.mxu0 %v1727_v0 }
  0xc9   : > { %1367 = vmatpush3.bf16.msra.mxu0 %v1514_v43 }
  0xca   : > { %1392 = vmatprep.subr.bf16.mxu0 %v1727_v0 }
 0x16b   : > { %v513_v46 = vpop.f32.mrb[0].mxu1 }
 0x16c   : > { %v1318_v47 = vpop.f32.mrb[1].mxu1 }
 0x16d   : > { %v516_v48 = vpop.f32.mrb[2].mxu1  ;;  %v1236_v47 = vld [vmem:[%s2139_s6] ss:$0 sm:$0xff] }
 0x16e   : > { %v1319_v49 = vpop.f32.mrb[3].mxu1 }
 0x16f   : > { %v446_v50 = vpop.f32.mrb[0].mxu0 }
 0x170   : > { %v514_v51 = vadd.f32 %v513_v46, %v446_v50  ;;  %v1306_v52 = vpop.f32.mrb[1].mxu0  ;;  %v1235_v46 = vld [vmem:[%s2137_s4] ss:$0 sm:$0xff] }
 0x171   : > { %v449_v53 = vpop.f32.mrb[2].mxu0 }
 0x172   : > { %v517_v54 = vadd.f32 %v516_v48, %v449_v53  ;;  %v1307_v55 = vpop.f32.mrb[3].mxu0 }
 0x17f   : > { %v596_v56 = vpop.f32.mrb[4].mxu0 }
 0x180   : > { %v603_v58 = vadd.f32 %v596_v56, %v514_v51  ;;  %v1330_v59 = vpop.f32.mrb[5].mxu0 }
 0x181   : > { %v599_v60 = vpop.f32.mrb[6].mxu0 }
 0x182   : > { %v612_v61 = vadd.f32 %v1210_v57, %v603_v58  ;;  %v604_v62 = vadd.f32 %v599_v60, %v517_v54  ;;  %v1331_v63 = vpop.f32.mrb[7].mxu0 }
 0x184   : > { %v614_v1 = vmax.f32 %v612_v61, 0.0  ;;  %v613_v2 = vadd.f32 %v1210_v57, %v604_v62 }
 0x186   : > { %618 = vst [vmem:[#allocation3 + $0x1] sm:$0xff] %v614_v1  ;;  %v615_v3 = vmax.f32 %v613_v2, 0.0 }
 0x188   : > { %619 = vst [vmem:[#allocation3 + $0x9] sm:$0xff] %v615_v3 }
 0x18d   : > { %v620_v5 = vld [vmem:[#allocation3] sm:$0xff] }
 0x18f   : > { %v621_v6 = vld [vmem:[#allocation3 + $0x8] sm:$0xff]  ;;  %v622_v9 = vld [vmem:[#allocation3 + $0x10] sm:$0x3] }
 0x190   : > { %v623_v10 = vpack.c.bf16 %v621_v6, %v620_v5  ;;  %v640_v11 = vpack.c.bf16 %v622_v9, %v622_v9 }
 0x192   : > { %1369 = vmatmul.mubr.bf16.vlgmr.msra.gmra.mrb[8].mxu0 %v623_v10  ;;  %v661_v12 = vshll.u32 %v623_v10, 16  ;;  %v666_v13 = vshll.u32 %v640_v11, 16  ;;  %v659_v15 = vshrl.u32 %v623_v10, 16  ;;  %v868_v8 = vrot.slane %v623_v10, 1 }
 0x193   : > { %1393 = vmatpush3.bf16.msra.mxu0 %v1522_v4  ;;  %1400 = vmatprep.mubr.msk.bf16.mxu0 %vm1728_vm1, %v1727_v0  ;;  %v869_v30 = vrot.slane %v640_v11, 1 }
 0x194   : > { %v663_v16 = vrot.slane %v661_v12, 1  ;;  %1394 = vmatprep.subr.bf16.mxu0 %v1727_v0  ;;  %v668_v18 = vrot.slane %v666_v13, 1 }
 0x195   : > { %v870_v31 = vsel %vm531_vm4, %v868_v8, %v869_v30 }
 0x196   : > { %v664_v17 = vor.u32 %v663_v16, %v659_v15 }
 0x197   : > { %1395 = vmatpush3.bf16.msra.mxu0 %v1524_v14 }
 0x198   : > { %v669_v21 = vsel %vm372_vm3, %v664_v17, %v668_v18  ;;  %1396 = vmatprep.subr.bf16.mxu0 %v1727_v0 }
 0x199   : > { %1349 = vmatmul.mubr.bf16.vlgmr.msra.gmra.mrb[4].mxu1 %v669_v21 }
 0x19a   : > { %1373 = vmatpush3.bf16.msra.mxu1 %v1517_v19  ;;  %1388 = vmatprep.mubr.msk.bf16.mxu1 %vm1728_vm1, %v1727_v0 }
 0x19b   : > { %1374 = vmatprep.subr.bf16.mxu1 %v1727_v0  ;;  %1397 = vmatpush3.bf16.msra.mxu0 %v1526_v20 }
 0x19c   : > { %1398 = vmatprep.subr.bf16.mxu0 %v1727_v0 }
 0x19e   : > { %1375 = vmatpush3.bf16.msra.mxu1 %v1518_v22 }
 0x19f   : > { %1376 = vmatprep.subr.bf16.mxu1 %v1727_v0  ;;  %1399 = vmatpush3.bf16.msra.mxu0 %v1528_v23 }
 0x1a2   : > { %1377 = vmatpush3.bf16.msra.mxu1 %v1519_v24  ;;  %1401 = vmatmul.mubr.msk.bf16.vlgmr.msra.gmra.mrb[12].mxu0 %vm347_vm2, %v974_v25 }
 0x1a3   : > { %1378 = vmatprep.subr.bf16.mxu1 %v1727_v0 }
 0x1a6   : > { %1379 = vmatpush3.bf16.msra.mxu1 %v1520_v26 }
 0x1a7   : > { %1380 = vmatprep.subr.bf16.mxu1 %v1727_v0 }
 0x1aa   : > { %1381 = vmatpush3.bf16.msra.mxu1 %v1521_v27 }
 0x1ab   : > { %1382 = vmatprep.subr.bf16.mxu1 %v1727_v0 }
 0x1ae   : > { %1383 = vmatpush3.bf16.msra.mxu1 %v1523_v28 }
 0x1af   : > { %1384 = vmatprep.subr.bf16.mxu1 %v1727_v0 }
 0x1b2   : > { %1385 = vmatpush3.bf16.msra.mxu1 %v1525_v29 }
 0x1b3   : > { %1386 = vmatprep.subr.bf16.mxu1 %v1727_v0 }
 0x1b6   : > { %1387 = vmatpush3.bf16.msra.mxu1 %v1527_v7 }
 0x1b9   : > { %1389 = vmatmul.mubr.bf16.vlgmr.msra.gmra.mrb[8].mxu1 %v870_v31 }
 0x265   : > { %v842_v32 = vpop.f32.mrb[8].mxu0 }
 0x266   : > { %v1370_v33 = vpop.f32.mrb[9].mxu0 }
 0x267   : > { %v845_v34 = vpop.f32.mrb[10].mxu0 }
 0x268   : > { %v1371_v35 = vpop.f32.mrb[11].mxu0 }
 0x26c   : > { %v753_v36 = vpop.f32.mrb[4].mxu1 }
 0x26d   : > { %v843_v37 = vadd.f32 %v842_v32, %v753_v36  ;;  %v1350_v38 = vpop.f32.mrb[5].mxu1 }
 0x26e   : > { %v756_v39 = vpop.f32.mrb[6].mxu1 }
 0x26f   : > { %v846_v40 = vadd.f32 %v845_v34, %v756_v39  ;;  %v1351_v41 = vpop.f32.mrb[7].mxu1 }
 0x275   : > { %v1051_v42 = vpop.f32.mrb[12].mxu0 }
 0x276   : > { %v1402_v43 = vpop.f32.mrb[13].mxu0  ;;  %v1052_v52 = vadd.f32 %v1236_v47, %v1051_v42 }
 0x277   : > { %v1054_v0 = vpop.f32.mrb[14].mxu0 }
 0x278   : > { %v1403_v44 = vpop.f32.mrb[15].mxu0  ;;  %v1055_v59 = vadd.f32 %v1236_v47, %v1054_v0 }
 0x28c   : > { %v954_v45 = vpop.f32.mrb[8].mxu1 }
 0x28d   : > { %v961_v48 = vadd.f32 %v954_v45, %v843_v37  ;;  %v1390_v49 = vpop.f32.mrb[9].mxu1 }
 0x28e   : > { %v957_v50 = vpop.f32.mrb[10].mxu1 }
 0x28f   : > { %v970_v51 = vadd.f32 %v1235_v46, %v961_v48  ;;  %v962_v53 = vadd.f32 %v957_v50, %v846_v40  ;;  %v1391_v54 = vpop.f32.mrb[11].mxu1 }
 0x291   : > { %v972_v55 = vmax.f32 %v970_v51, 0.0  ;;  %v971_v56 = vadd.f32 %v1235_v46, %v962_v53 }
 0x293   : > { %v1058_v57 = vadd.f32 %v1052_v52, %v972_v55  ;;  %v973_v58 = vmax.f32 %v971_v56, 0.0 }
 0x295   : > { %v1060_v60 = vmax.f32 %v1058_v57, 0.0  ;;  %v1059_v61 = vadd.f32 %v1055_v59, %v973_v58 }
 0x297   : > { %1062 = vst [vmem:[%s340_s15] sm:$0xff] %v1060_v60  ;;  %v1061_v62 = vmax.f32 %v1059_v61, 0.0 }
 0x299   : > { %1063 = vst [vmem:[%s340_s15 + $0x8] sm:$0xff] %v1061_v62 }
 0x29a   : > { %1656 = shalt.err (!%p1653_p4)
}
 0x29b   : > { %s1657_s23 = scalar_lea.hbm %s2089_s13, 256  ;;  %s1661_s14 = scalar_lea.hbm %s2140_s7, 512 }
 0x29c   : > { %p1658_p9 = scmp.ne.s32.totalorder %s2089_s13, %s1657_s23  ;;  %p1662_p8 = scmp.lt.u32.totalorder %s2089_s13, %s2140_s7 }
 0x29d   : > { %p1663_p13 = scmp.lt.u32.totalorder %s1661_s14, %s1657_s23  ;;  %p1665_p10 = scmp.lt.u32.totalorder %s1657_s23, %s2089_s13 }
 0x29e   : > { %p1659_p0 = pnand %p1658_p9, %p1926_p5 }
 0x29f   : > { %p1664_p6 = por %p1663_p13, %p1662_p8 }
 0x2a0   : > { %p1660_p11 = pneg %p1659_p0 }
 0x2a1   : > { %p1666_p3 = por %p1665_p10, %p1664_p6 }
 0x2a3   : > { %p1667_p7 = pnand %p1666_p3, %p1660_p11 }
 0x2a5   : > { %1670 = shalt.err (!%p1667_p7)
}
 0x2a6   : > { %s1730_s8 = smov 128   ;;  %s1731_s17 = smov 8  }
 0x2a7   : > { %1418 = dma.vmem_to_hbm [thread:$0]  (%p1926_p5), %s2084_s29, 256, %s2089_s13, %s1065_s16, %s1730_s8, %s1730_s8, %s1731_s17  }
 0x2a8 PF: > { %s2160_s20 = sld [smem:[#allocation17_spill]]  ;;  %s1093_s28 = sand.u32 1, %s1705_s24  }
 0x2a9   : > { %p2162_p1 = scmp.ge.s32.totalorder %s1717_s27, 2  ;;  %s1094_s30 = scalar_lea.sflag [#allocation6], %s1093_s28 }
 0x2ae   : > { %p2161_p12 = scmp.ne.s32.totalorder %s2160_s20, 0 }
 0x2b0   : > { %p1435_p2 = pnand %p2162_p1, %p2161_p12 }
 0x2b2   : > { %1700 = dma.done.wait (!%p1435_p2), %s1094_s30, 256  }
 0x2b3   : > { %1702 = vsyncadd (!%p1435_p2), %s1094_s30, 4294967040  ;;  %p22_p4 = scmp.ge.s32.totalorder %s1912_s22, 4   ;;  %s2163_s24 = smov %s1709_s25 }
 0x2b4   : > { %s2164_s25 = smov %s1713_s26  ;;  %s2165_s26 = smov %s1922_s18 }
 0x2b5   : > { %s2166_s27 = smov %s1912_s22  ;;  %24 = sbr.rel (!%p22_p4) target bundleno = 7 (0x7), region = 109 }
 0x2bc   :  { %1099 = vsyncpa [#allocation5], 1 }
 0x2bd   :  { %1101 = vsyncpa [#allocation5 + $0x1], 1 }
 0x2be   :  { %1102 = vsyncpa [#allocation8], 1 }
 0x2bf   :  { %1103 = vsyncpa [#allocation11], 1 }
 0x2c0   :  { %1104 = vsyncpa [#allocation6], 1 }
 0x2c1   :  { %1106 = vsyncpa [#allocation6 + $0x1], 1 }

</bundles_post_ra>
